<compile_context>
chip_gen: v5e
topology: v5e:2x2
jax: 0.10.0
libtpu: 0.0.40
codegen_flags: <defaults>
</compile_context>

<pallas_src>
import jax
import jax.numpy as jnp
from jax.experimental import pallas as pl
from jax.experimental.pallas import tpu as pltpu


def _round_up(x, m):
    return pl.cdiv(x, m) * m


def _rbfnn_kernel(z_ref, cs_ref, lam_ref, bias_ref, wt_ref, zeta_ref, o_ref):
    # z:    (TILE_N, D)   latent codes (current row-tile)
    # cs:   (D, K)        (2 * lambda_k * centers_k).T  (pre-scaled, pre-transposed)
    # lam:  (1, K)        lambda_k
    # bias: (1, K)        -lambda_k * ||centers_k||^2
    # wt:   (K, W_pad)    W_rbf.T zero-padded to a multiple of 128 lanes
    # zeta: (1, 1) SMEM   scalar offset
    z = z_ref[...]
    z2 = jnp.sum(z * z, axis=1, keepdims=True)                        # (TILE_N, 1)

    # exponent = -lambda*dist2 = z @ (2*lam*c).T - lam*||c||^2 - lam*||z||^2
    expo = (jnp.dot(z, cs_ref[...], preferred_element_type=jnp.float32)
            + bias_ref[...] - z2 * lam_ref[...])                      # (TILE_N, K)
    # True exponent is <= 0; clamp guards float cancellation (dist2 < 0).
    expo = jnp.minimum(expo, 0.0)
    v_z = jnp.exp(expo)

    out = jnp.dot(v_z, wt_ref[...], preferred_element_type=jnp.float32)
    o_ref[...] = (out + zeta_ref[0, 0]).astype(o_ref.dtype)


def rbfnn_forward(z, centers_rbf, lambdas_k, W_rbf, zeta_rbf, *, tile_n=2048):
    """z: (N, D), centers_rbf: (K, D), lambdas_k: (K, 1), W_rbf: (W_dim, K)."""
    n, d = z.shape
    w_dim, k = W_rbf.shape

    # ---- host-side (plain JAX) grid-invariant parameter folding ----
    lam = lambdas_k.reshape(1, k).astype(jnp.float32)                 # (1, K)
    c = centers_rbf.astype(jnp.float32)                               # (K, D)
    c2 = jnp.sum(c * c, axis=1)[None, :]                              # (1, K)
    cs_t = c.T * (2.0 * lam)                                          # (D, K) = (2*lam*c).T
    bias = -lam * c2                                                  # (1, K)

    # lane-dense output: pad W_dim to a multiple of 128
    w_pad = _round_up(w_dim, 128)
    wt = jnp.zeros((k, w_pad), jnp.float32).at[:, :w_dim].set(
        W_rbf.T.astype(jnp.float32))

    # row tiling (multiple of 8 sublanes), pad N up to a whole number of tiles
    tile = min(int(tile_n), _round_up(n, 8))
    tile = _round_up(tile, 8)
    n_pad = _round_up(n, tile)
    z_in = z.astype(jnp.float32)
    if n_pad != n:
        z_in = jnp.zeros((n_pad, d), jnp.float32).at[:n].set(z_in)

    zeta_arr = jnp.asarray(zeta_rbf, dtype=jnp.float32).reshape(1, 1)

    grid = (n_pad // tile,)
    out = pl.pallas_call(
        _rbfnn_kernel,
        out_shape=jax.ShapeDtypeStruct((n_pad, w_pad), jnp.float32),
        grid=grid,
        in_specs=[
            pl.BlockSpec((tile, d), lambda i: (i, 0)),            # z  (streamed)
            pl.BlockSpec((d, k), lambda i: (0, 0)),               # scaled centers^T
            pl.BlockSpec((1, k), lambda i: (0, 0)),               # lambdas
            pl.BlockSpec((1, k), lambda i: (0, 0)),               # bias
            pl.BlockSpec((k, w_pad), lambda i: (0, 0)),           # W_rbf^T (padded)
            pl.BlockSpec(memory_space=pltpu.MemorySpace.SMEM),    # zeta scalar
        ],
        out_specs=pl.BlockSpec((tile, w_pad), lambda i: (i, 0)),
        compiler_params=pltpu.CompilerParams(
            dimension_semantics=("parallel",),
            vmem_limit_bytes=32 * 1024 * 1024,
        ),
    )(z_in, cs_t, lam, bias, wt, zeta_arr)

    return out[:n, :w_dim]


def rbfnn_reference(z, centers_rbf, lambdas_k, W_rbf, zeta_rbf):
    diff = z[:, None, :] - centers_rbf[None, :, :]
    dist2 = jnp.sum(diff * diff, axis=2)
    v_z = jnp.exp(-dist2 * lambdas_k.T)
    return v_z @ W_rbf.T + zeta_rbf


if __name__ == "__main__":
    # Module hyperparameters (small, deterministic).
    # TODO(synk): fit_kmeans / compute_bandwidth are training-time sklearn setup,
    # not part of forward; bandwidths are emulated below.
    a = 1.0
    k_rbf = 16
    zeta_rbf = 0.1
    W_dim = 64
    latent_dim = 32
    n = 40                     # deliberately not a tile multiple -> exercises padding

    key = jax.random.PRNGKey(0)
    kz, kc, ks, kw = jax.random.split(key, 4)

    z = jax.random.normal(kz, (n, latent_dim), dtype=jnp.float32)
    centers_rbf = jax.random.normal(kc, (k_rbf, latent_dim), dtype=jnp.float32)
    # Bandwidths: emulate compute_bandwidth -> lambdas = 0.5 / (a*sigma)^2, sigma > 0.
    sigma = jax.random.uniform(ks, (k_rbf, 1), dtype=jnp.float32,
                               minval=0.5, maxval=1.5)
    lambdas_k = 0.5 / (a * sigma) ** 2
    # W_rbf ~ torch.rand(W_dim, k_rbf)  (uniform [0, 1))
    W_rbf = jax.random.uniform(kw, (W_dim, k_rbf), dtype=jnp.float32)

    # small tile to exercise the multi-step grid + N padding path
    out = rbfnn_forward(z, centers_rbf, lambdas_k, W_rbf, zeta_rbf, tile_n=16)
    out = jax.block_until_ready(out)

    ref = rbfnn_reference(z, centers_rbf, lambdas_k, W_rbf, zeta_rbf)
    assert out.shape == (n, W_dim)
    assert jnp.allclose(out, ref, atol=1e-4, rtol=1e-4), "mismatch vs reference"

    print("KERNEL_OK")
</pallas_src>

<mosaic_0001>
module attributes {stable_mosaic.version = 11 : i64} {
  func.func @_rbfnn_kernel(%arg0: i32, %arg1: memref<16x32xf32, #tpu.memory_space<vmem>>, %arg2: memref<32x16xf32, #tpu.memory_space<vmem>>, %arg3: memref<1x16xf32, #tpu.memory_space<vmem>>, %arg4: memref<1x16xf32, #tpu.memory_space<vmem>>, %arg5: memref<16x128xf32, #tpu.memory_space<vmem>>, %arg6: memref<1x1xf32, #tpu.memory_space<smem>>, %arg7: memref<16x128xf32, #tpu.memory_space<vmem>>) attributes {dimension_semantics = [#tpu.dimension_semantics<parallel>], iteration_bounds = array<i64: 3>, scalar_prefetch = 0 : i64, scratch_operands = 0 : i64, tpu.core_type = #tpu.core_type<tc>, window_params = [{transform_indices = @transform_0, window_bounds = array<i64: 16, 32>}, {pipeline_mode = #tpu.pipeline_mode<synchronous>, transform_indices = @transform_1, window_bounds = array<i64: 32, 16>}, {pipeline_mode = #tpu.pipeline_mode<synchronous>, transform_indices = @transform_2, window_bounds = array<i64: 1, 16>}, {pipeline_mode = #tpu.pipeline_mode<synchronous>, transform_indices = @transform_3, window_bounds = array<i64: 1, 16>}, {pipeline_mode = #tpu.pipeline_mode<synchronous>, transform_indices = @transform_4, window_bounds = array<i64: 16, 128>}, {transform_indices = @transform_5, window_bounds = array<i64: 1, 1>}, {transform_indices = @transform_6, window_bounds = array<i64: 16, 128>}]} {
    %c0 = arith.constant 0 : index
    %c0_0 = arith.constant 0 : index
    %0 = vector.load %arg1[%c0, %c0_0] : memref<16x32xf32, #tpu.memory_space<vmem>>, vector<16x32xf32>
    %1 = arith.mulf %0, %0 : vector<16x32xf32>
    %cst = arith.constant dense<0.000000e+00> : vector<16xf32>
    %2 = vector.multi_reduction <add>, %1, %cst [1] : vector<16x32xf32> to vector<16xf32>
    %3 = vector.shape_cast %2 : vector<16xf32> to vector<16x1xf32>
    %c0_1 = arith.constant 0 : index
    %c0_2 = arith.constant 0 : index
    %4 = vector.load %arg2[%c0_1, %c0_2] : memref<32x16xf32, #tpu.memory_space<vmem>>, vector<32x16xf32>
    %cst_3 = arith.constant dense<0.000000e+00> : vector<16x16xf32>
    %5 = tpu.matmul %0, %4, %cst_3 {dimension_numbers = #tpu.dot_dimension_numbers<[1], [0], [0], [1], [0, 0, 1, 1], [], []>} : vector<16x32xf32>, vector<32x16xf32>, vector<16x16xf32> -> vector<16x16xf32>
    %c0_4 = arith.constant 0 : index
    %c0_5 = arith.constant 0 : index
    %6 = vector.load %arg4[%c0_4, %c0_5] : memref<1x16xf32, #tpu.memory_space<vmem>>, vector<1x16xf32>
    %7 = vector.broadcast %6 : vector<1x16xf32> to vector<16x16xf32>
    %8 = arith.addf %5, %7 : vector<16x16xf32>
    %c0_6 = arith.constant 0 : index
    %c0_7 = arith.constant 0 : index
    %9 = vector.load %arg3[%c0_6, %c0_7] : memref<1x16xf32, #tpu.memory_space<vmem>>, vector<1x16xf32>
    %10 = vector.broadcast %3 : vector<16x1xf32> to vector<16x16xf32>
    %11 = vector.broadcast %9 : vector<1x16xf32> to vector<16x16xf32>
    %12 = arith.mulf %10, %11 : vector<16x16xf32>
    %13 = arith.subf %8, %12 : vector<16x16xf32>
    %cst_8 = arith.constant 0.000000e+00 : f32
    %14 = vector.broadcast %cst_8 : f32 to vector<16x16xf32>
    %15 = arith.minimumf %13, %14 : vector<16x16xf32>
    %16 = math.exp %15 : vector<16x16xf32>
    %c0_9 = arith.constant 0 : index
    %c0_10 = arith.constant 0 : index
    %17 = vector.load %arg5[%c0_9, %c0_10] : memref<16x128xf32, #tpu.memory_space<vmem>>, vector<16x128xf32>
    %cst_11 = arith.constant dense<0.000000e+00> : vector<16x128xf32>
    %18 = tpu.matmul %16, %17, %cst_11 {dimension_numbers = #tpu.dot_dimension_numbers<[1], [0], [0], [1], [0, 0, 1, 1], [], []>} : vector<16x16xf32>, vector<16x128xf32>, vector<16x128xf32> -> vector<16x128xf32>
    %c0_12 = arith.constant 0 : index
    %c0_13 = arith.constant 0 : index
    %19 = memref.load %arg6[%c0_12, %c0_13] : memref<1x1xf32, #tpu.memory_space<smem>>
    %20 = vector.broadcast %19 : f32 to vector<16x128xf32>
    %21 = arith.addf %18, %20 : vector<16x128xf32>
    %c0_14 = arith.constant 0 : index
    %c0_15 = arith.constant 0 : index
    %22 = vector.load %arg7[%c0_14, %c0_15] : memref<16x128xf32, #tpu.memory_space<vmem>>, vector<16x128xf32>
    tpu.vector_store %arg7[%c0_14, %c0_15], %21 {strides = array<i32>} : memref<16x128xf32, #tpu.memory_space<vmem>>, vector<16x128xf32>,
    return
  }
  func.func @transform_0(%arg0: i32) -> (i32, i32) {
    %c0_i32 = arith.constant 0 : i32
    %c0_i32_0 = arith.constant 0 : i32
    return %arg0, %c0_i32 : i32, i32
  }
  func.func @transform_1(%arg0: i32) -> (i32, i32) {
    %c0_i32 = arith.constant 0 : i32
    %c0_i32_0 = arith.constant 0 : i32
    %c0_i32_1 = arith.constant 0 : i32
    return %c0_i32, %c0_i32_0 : i32, i32
  }
  func.func @transform_2(%arg0: i32) -> (i32, i32) {
    %c0_i32 = arith.constant 0 : i32
    %c0_i32_0 = arith.constant 0 : i32
    %c0_i32_1 = arith.constant 0 : i32
    return %c0_i32, %c0_i32_0 : i32, i32
  }
  func.func @transform_3(%arg0: i32) -> (i32, i32) {
    %c0_i32 = arith.constant 0 : i32
    %c0_i32_0 = arith.constant 0 : i32
    %c0_i32_1 = arith.constant 0 : i32
    return %c0_i32, %c0_i32_0 : i32, i32
  }
  func.func @transform_4(%arg0: i32) -> (i32, i32) {
    %c0_i32 = arith.constant 0 : i32
    %c0_i32_0 = arith.constant 0 : i32
    %c0_i32_1 = arith.constant 0 : i32
    return %c0_i32, %c0_i32_0 : i32, i32
  }
  func.func @transform_5(%arg0: i32) -> (i32, i32) {
    %c0_i32 = arith.constant 0 : i32
    %c0_i32_0 = arith.constant 0 : i32
    %c0_i32_1 = arith.constant 0 : i32
    return %c0_i32, %c0_i32_0 : i32, i32
  }
  func.func @transform_6(%arg0: i32) -> (i32, i32) {
    %c0_i32 = arith.constant 0 : i32
    %c0_i32_0 = arith.constant 0 : i32
    return %arg0, %c0_i32 : i32, i32
  }
}

</mosaic_0001>

<bundles_post_ra>
// kernel: tpu_custom_call.1
= control target key start
LH: loop header
LB: loop body
LE: loop exit
PB: predicated region body
PF: predicated region fallthrough
CT: control target
= control target key end

     0   :  { %s712_s0 = inlined_call_operand.vmem [shape: f32[48,32], index: 0, kind: input, shape index: {}]   ;;  %s713_s1 = inlined_call_operand.vmem [shape: f32[32,16], index: 1, kind: input, shape index: {}]   ;;  %s714_s2 = inlined_call_operand.vmem [shape: f32[1,16], index: 2, kind: input, shape index: {}]   ;;  %s715_s3 = inlined_call_operand.vmem [shape: f32[1,16], index: 3, kind: input, shape index: {}]   ;;  %s716_s4 = inlined_call_operand.vmem [shape: f32[16,128], index: 4, kind: input, shape index: {}]   ;;  %s717_s5 = inlined_call_operand.<no memory space> [shape: f32[1,1], index: 5, kind: input, shape index: {}]   ;;  %s718_s6 = inlined_call_operand.hbm [shape: f32[48,128], index: 6, kind: output, shape index: {}]  }
   0x1   :  { %11 = sst [smem:[#allocation2]] %s717_s5 }
   0x2   :  { %12 = vsyncpa [#allocation4], 0 }
   0x3   :  { %14 = vsyncpa [#allocation4 + $0x1], 0  ;;  %s604_s23 = smov 0   ;;  %s606_s24 = smov 0  }
   0x4   :  { %s608_s25 = smov 0   ;;  %s610_s26 = smov 0  }
   0x5 LB: > { %s625_s5 = sadd.s32 4294967295, %s562_s26   ;;  %s430_s27 = sadd.s32 4294967294, %s562_s26   ;;  %s562_s26 = sphi %s610_s26, %s724_s26   ;;  %s558_s25 = sphi %s608_s25, %s723_s25   ;;  %s554_s24 = sphi %s606_s24, %s722_s24   ;;  %s550_s23 = sphi %s604_s23, %s721_s23  }
   0x6   : > { %s629_s28 = sadd.s32 1, %s562_s26   ;;  %s158_s29 = sadd.s32 1, %s558_s25 }
   0x7   : > { %s155_s30 = ssub.s32 %s562_s26, %s629_s28  ;;  %p168_p0 = scmp.ne.s32.totalorder %s558_s25, %s554_s24 }
   0x8   : > { %p156_p1 = scmp.eq.s32.totalorder %s155_s30, 0  ;;  %p169_p2 = scmp.eq.s32.totalorder %s625_s5, 2 }
   0x9   : > { %p174_p3 = scmp.ne.s32.totalorder %s554_s24, %s550_s23  ;;  %p175_p4 = scmp.eq.s32.totalorder %s430_s27, 2 }
   0xa   : > { %s640_s7 = scalar_select %p156_p1, %s558_s25, %s158_s29  }
   0xb   : > { %p642_p5 = por %p169_p2, %p168_p0  ;;  %p646_p6 = por %p175_p4, %p174_p3 }
   0xc   : > { %p433_p7 = scmp.ge.s32.totalorder %s562_s26, 1  ;;  %p217_p8 = scmp.lt.s32.totalorder %s562_s26, 4 }
   0xe   : > { %p218_p9 = pnand %p433_p7, %p217_p8 }
   0xf   : > { %s435_s14 = sshll.u32 (!%p218_p9), %s625_s5, 1  ;;  %s318_s15 = sld [smem:[#allocation2]] (!%p218_p9) }
  0x10   : > { %221 = sbr.rel (%p218_p9) target bundleno = 314 (0x13a), region = 44  ;;  %p248_p10 = scmp.lt.s32.totalorder (!%p218_p9), %s435_s14, 5 }
  0x11   : > { %s244_s16 = sand.u32 (!%p218_p9), 1, %s554_s24   ;;  %s446_s18 = sshll.u32 (!%p218_p9), %s625_s5, 4 }
  0x12   : > { %s434_s17 = sshll.u32 (!%p218_p9), %s244_s16, 4  ;;  %s353_s30 = scalar_lea.sflag (!%p218_p9), [#allocation4], %s244_s16 }
  0x13   : > { %s520_s13 = scalar_lea.hbm (!%p218_p9), %s718_s6, 48 }
  0x15   : > { %v268_v0 = vld [vmem:[%s713_s1 + $0x18] sm:$0xff]  ;;  %v267_v1 = vld [vmem:[%s713_s1 + $0x10] sm:$0xff]  ;;  %v266_v2 = vld [vmem:[%s713_s1 + $0x8] sm:$0xff]  ;;  %s726_s14 = smov (!%p248_p10, %s435_s14), 5  ;;  %vm258_vm0 = vcmask 261120   ;;  %vm320_vm1 = vcmask 130048   ;;  %v319_v30 = vstv %s318_s15 }
  0x16   : > { %447 = vmatpush.msra.mxu2 %v268_v0  ;;  %291 = vmatpush.msra.mxu0 %v268_v0  ;;  %v265_v3 = vld [vmem:[%s713_s1] sm:$0xff]  ;;  %s436_s19 = sshll.u32 %s726_s14, 3  ;;  %v317_v10 = vld [vmem:[%s716_s4 + $0x8] sm:$0xff] }
  0x17   : > { %s251_s22 = scalar_lea.vmem %s712_s0, %s436_s19  ;;  %v316_v11 = vld [vmem:[%s716_s4] sm:$0xff]  ;;  %451 = vmatpush.msra.mxu3 %v317_v10  ;;  %341 = vmatpush.msra.mxu1 %v317_v10  ;;  %s246_s19 = scalar_lea.vmem [#allocation3], %s434_s17 }
  0x18   : > { %448 = vmatpush.msra.mxu2 %v267_v1  ;;  %292 = vmatpush.msra.mxu0 %v267_v1  ;;  %v255_v4 = vld [vmem:[%s251_s22 + $0x8] sm:$0xff]  ;;  %v254_v5 = vld [vmem:[%s251_s22] sm:$0xff]  ;;  %s364_s22 = scalar_lea.hbm %s718_s6, %s446_s18  ;;  %s365_s27 = sshll.u32 %s246_s19, 4  ;;  %s366_s27 = int_to_ptr.vmem [resolvable:$true] %s365_s27 }
  0x19   : > { %v257_v6 = vmul.f32 %v255_v4, %v255_v4  ;;  %v256_v8 = vmul.f32 %v254_v5, %v254_v5  ;;  %452 = vmatpush.msra.mxu3 %v316_v11  ;;  %342 = vmatpush.msra.mxu1 %v316_v11  ;;  %v495_v13 = vld [vmem:[%s715_s3] ss:$0 sm:$0xff]  ;;  %s367_s29 = sshll.u32 %s364_s22, 4  ;;  %s368_s29 = int_to_ptr.hbm [resolvable:$true] %s367_s29 }
  0x1a   : > { %449 = vmatpush.msra.mxu2 %v266_v2  ;;  %293 = vmatpush.msra.mxu0 %v266_v2  ;;  %v494_v14 = vld [vmem:[%s714_s2] ss:$0 sm:$0xff]  ;;  %s514_s10 = sshra.s32 %s368_s29, 4  ;;  %s515_s10 = int_to_ptr.hbm [resolvable:$true] %s514_s10 }
  0x1b   : > { %v262_v7 = vsel %vm258_vm0, %v257_v6, 0.0  ;;  %v259_v9 = vsel %vm258_vm0, %v256_v8, 0.0  ;;  %s516_s11 = scalar_lea.hbm %s515_s10, 16  ;;  %p521_p0 = scmp.lt.s32.totalorder %s515_s10, %s718_s6 }
  0x1c   : > { %450 = vmatpush.msra.mxu2 %v265_v3  ;;  %294 = vmatpush.msra.mxu0 %v265_v3  ;;  %p517_p11 = scmp.ne.s32.totalorder %s515_s10, %s516_s11  ;;  %p522_p1 = scmp.lt.s32.totalorder %s520_s13, %s516_s11 }
  0x1d   : > { %438 = vmatmul.msk.f32.vlgmr.msra.gmra.mxu2 %vm258_vm0, %v255_v4  ;;  %437 = vmatmul.msk.f32.vlgmr.msra.gmra.mxu0 %vm258_vm0, %v254_v5 }
  0x1e   : > { %263 = vadd.xlane.f32.xlu0 %v262_v7  ;;  %p518_p12 = pnand %p517_p11, %p642_p5  ;;  %p523_p2 = por %p522_p1, %p521_p0 }
  0x20   : > { %p519_p13 = pneg %p518_p12 }
  0x22   : > { %p524_p3 = pnand %p523_p2, %p519_p13 }
  0x26   : > { %260 = vadd.xlane.f32.xlu0 %v259_v9 }
  0x91   : > { %v264_v12 = vpop.xlane.xlu0 %263 }
  0x92   : > { %v307_v22 = vmul.f32 %v494_v14, %v264_v12 }
  0x99   : > { %v261_v17 = vpop.xlane.xlu0 %260 }
  0x9a   : > { %v296_v15 = vpop.f32.mrf.mxu0  ;;  %v306_v18 = vmul.f32 %v494_v14, %v261_v17 }
  0x9b   : > { %v297_v16 = vadd.f32 %v495_v13, %v296_v15 }
  0x9d   : > { %v308_v19 = vsub.f32 %v297_v16, %v306_v18 }
  0x9f   : > { %v310_v21 = vmin.f32 %v308_v19, 0.0 }
  0xa0   : > { %v299_v20 = vpop.f32.mrf.mxu2 }
  0xa1   : > { %v300_v23 = vadd.f32 %v495_v13, %v299_v20  ;;  %v312_v24 = vmul.f32 1.442695, %v310_v21 }
  0xa3   : > { %v309_v25 = vsub.f32 %v300_v23, %v307_v22  ;;  %496 = vpow2.f32 %v312_v24 }
  0xa5   : > { %v311_v26 = vmin.f32 %v309_v25, 0.0 }
  0xa7   : > { %v314_v27 = vmul.f32 1.442695, %v311_v26 }
  0xa9   : > { %498 = vpow2.f32 %v314_v27  ;;  %v497_v28 = vpop.eup %496 }
  0xaa   : > { %439 = vmatmul.msk.f32.vlgmr.msra.gmra.mxu1 %vm320_vm1, %v497_v28 }
  0xaf   : > { %v499_v29 = vpop.eup %498 }
  0xb0   : > { %440 = vmatmul.msk.f32.vlgmr.msra.gmra.mxu3 %vm320_vm1, %v499_v29 }
 0x127   : > { %v344_v31 = vpop.f32.mrf.mxu1 }
 0x128   : > { %v345_v32 = vadd.f32 %v344_v31, %v319_v30 }
 0x12a   : > { %350 = vst [vmem:[%s246_s19] sm:$0xff] %v345_v32 }
 0x133   : > { %v347_v33 = vpop.f32.mrf.mxu3 }
 0x134   : > { %v348_v34 = vadd.f32 %v347_v33, %v319_v30 }
 0x136   : > { %351 = vst [vmem:[%s246_s19 + $0x8] sm:$0xff] %v348_v34 }
 0x137   : > { %527 = shalt.err (!%p524_p3)
}
 0x138   : > { %s564_s16 = smov 128   ;;  %s565_s17 = smov 8  }
 0x139   : > { %453 = dma.vmem_to_hbm [thread:$0]  (%p642_p5), %s366_s27, 256, %s368_s29, %s353_s30, %s564_s16, %s564_s16, %s565_s17  }
 0x13a PF: > { %p459_p4 = scmp.ge.s32.totalorder %s562_s26, 2  ;;  %s382_s18 = sand.u32 1, %s550_s23  }
 0x13b   : > { %s383_s19 = scalar_lea.sflag [#allocation4], %s382_s18 }
 0x13c   : > { %p456_p7 = pnand %p459_p4, %p646_p6 }
 0x13e   : > { %p457_p8 = pneg %p456_p7 }
 0x140   : > { %545 = dma.done.wait (%p457_p8), %s383_s19, 256  }
 0x141   : > { %547 = vsyncadd (%p457_p8), %s383_s19, 4294967040  ;;  %p17_p9 = scmp.ge.s32.totalorder %s629_s28, 5   ;;  %s721_s23 = smov %s554_s24 }
 0x142   : > { %s722_s24 = smov %s558_s25  ;;  %s723_s25 = smov %s640_s7 }
 0x143   : > { %s724_s26 = smov %s629_s28  ;;  %19 = sbr.rel (!%p17_p9) target bundleno = 5 (0x5), region = 79 }
 0x148   :  { %389 = vsyncpa [#allocation4], 1 }
 0x149   :  { %391 = vsyncpa [#allocation4 + $0x1], 1 }

</bundles_post_ra>
